<compile_context>
chip_gen: v7x
topology: tpu7x:2x2x1
jax: 0.10.0
libtpu: 0.0.40
codegen_flags: <defaults>
</compile_context>

<pallas_src>
import functools

import jax
import jax.numpy as jnp
from jax.experimental import pallas as pl
from jax.experimental.pallas import tpu as pltpu

BN_EPS = 1e-5
IN_FEATS = 144      # 72 landmarks * 2
HID = 128
LANE = 128


def _round_up(n, m):
    return (n + m - 1) // m * m


def mlp_kernel(x_ref, w1_ref, b1_ref, w2_ref, b2_ref, o_ref):
    # ---- Linear(144->128) + ReLU ---------------------------------------------
    h = jnp.dot(x_ref[...], w1_ref[...], preferred_element_type=jnp.float32)
    h = jnp.maximum(h + b1_ref[...], 0.0)
    # BatchNorm1d (eval mode) is folded into w2/b2 on the host.
    # Dropout: identity in eval mode.
    # TODO(synk): training-mode dropout (stochastic mask via pltpu.prng_*) not emitted.
    # ---- Linear(128->l_pad) + Sigmoid ----------------------------------------
    logits = jnp.dot(h, w2_ref[...], preferred_element_type=jnp.float32) + b2_ref[...]
    o_ref[...] = jax.nn.sigmoid(logits)


def prepare_params(params):
    """One-time host-side prep: fold eval-mode BatchNorm into the second linear
    and pad the label dim to a lane-dense multiple of 128."""
    w1, b1, gamma, beta, rmean, rvar, w2, b2 = params
    num_labels = w2.shape[1]

    s = gamma.reshape(HID) * jax.lax.rsqrt(rvar.reshape(HID) + BN_EPS)        # (128,)
    w2_eff = w2 * s[:, None]                                                   # (128, L)
    b2_eff = (beta.reshape(HID) - rmean.reshape(HID) * s) @ w2 + b2.reshape(num_labels)

    l_pad = _round_up(num_labels, LANE)
    w2_eff = jnp.pad(w2_eff, ((0, 0), (0, l_pad - num_labels)))                # (128, l_pad)
    b2_eff = jnp.pad(b2_eff, (0, l_pad - num_labels)).reshape(1, l_pad)        # (1, l_pad)

    return (w1.astype(jnp.float32),          # (144, 128)
            b1.reshape(1, HID).astype(jnp.float32),
            w2_eff.astype(jnp.float32),
            b2_eff.astype(jnp.float32))


def _choose_tb(b_pad8, block_rows):
    """Batch tile: multiple of 8, capped at block_rows, and small enough that
    large batches get >= 2 grid steps (so the 'parallel' axis can shard across
    v7x's two TensorCores)."""
    half = _round_up(pl.cdiv(b_pad8, 2), 8)
    return max(8, min(block_rows, half))


@functools.partial(jax.jit, static_argnames=("num_labels", "block_rows"))
def mlp_forward(landmarks, prepared, *, num_labels, block_rows=2048):
    """landmarks: (B, ...) whose trailing dims flatten to 144. Returns (B, num_labels)."""
    w1, b1_p, w2_eff, b2_eff = prepared
    l_pad = w2_eff.shape[1]

    B = landmarks.shape[0]
    x = landmarks.reshape(B, -1).astype(jnp.float32)
    assert x.shape[1] == IN_FEATS, f"expected {IN_FEATS} flattened features, got {x.shape[1]}"

    # Pad B only to a multiple of 8 (sublane alignment); the grid may have a
    # partial last block, which Pallas handles.
    b_pad8 = _round_up(B, 8)
    x_p = jnp.pad(x, ((0, b_pad8 - B), (0, 0)))                                # (b_pad8, 144)

    tb = _choose_tb(b_pad8, block_rows)
    grid = (pl.cdiv(b_pad8, tb),)

    out = pl.pallas_call(
        mlp_kernel,
        out_shape=jax.ShapeDtypeStruct((b_pad8, l_pad), jnp.float32),
        grid=grid,
        in_specs=[
            pl.BlockSpec((tb, IN_FEATS), lambda i: (i, 0)),     # x tile streams over batch
            pl.BlockSpec((IN_FEATS, HID), lambda i: (0, 0)),    # W1 resident
            pl.BlockSpec((1, HID), lambda i: (0, 0)),           # b1 resident
            pl.BlockSpec((HID, l_pad), lambda i: (0, 0)),       # folded W2 resident
            pl.BlockSpec((1, l_pad), lambda i: (0, 0)),         # folded b2 resident
        ],
        out_specs=pl.BlockSpec((tb, l_pad), lambda i: (i, 0)),
        compiler_params=pltpu.CompilerParams(
            dimension_semantics=("parallel",)),
    )(x_p, w1, b1_p, w2_eff, b2_eff)

    return out[:B, :num_labels]


def init_params(key, num_labels=12):
    """Deterministic synthetic parameters matching the module's shapes."""
    k1, k2, k3, k4, k5, k6 = jax.random.split(key, 6)
    # Linear weights stored as (in, out) — transposed vs torch's (out, in).
    w1 = jax.random.normal(k1, (IN_FEATS, HID), jnp.float32) * 0.05
    b1 = jax.random.normal(k2, (1, HID), jnp.float32) * 0.05
    gamma = jax.random.normal(k3, (1, HID), jnp.float32) * 0.1 + 1.0   # BN weight
    beta = jax.random.normal(k4, (1, HID), jnp.float32) * 0.1          # BN bias
    rmean = jax.random.normal(k5, (1, HID), jnp.float32) * 0.1         # running_mean
    rvar = jnp.abs(jax.random.normal(k6, (1, HID), jnp.float32)) * 0.1 + 0.9  # running_var
    kw2, kb2 = jax.random.split(k1)
    w2 = jax.random.normal(kw2, (HID, num_labels), jnp.float32) * 0.05
    b2 = jax.random.normal(kb2, (1, num_labels), jnp.float32) * 0.05
    return (w1, b1, gamma, beta, rmean, rvar, w2, b2)


def reference_forward(landmarks, params):
    """Pure-JAX reference (unfolded BN) for correctness checking."""
    w1, b1, gamma, beta, rmean, rvar, w2, b2 = params
    x = landmarks.reshape(landmarks.shape[0], -1).astype(jnp.float32)
    h = jnp.maximum(x @ w1 + b1, 0.0)
    h = (h - rmean) / jnp.sqrt(rvar + BN_EPS) * gamma + beta
    return jax.nn.sigmoid(h @ w2 + b2)


if __name__ == "__main__":
    key = jax.random.PRNGKey(0)
    k_in, k_par = jax.random.split(key)

    batch = 8
    num_labels = 12
    # Landmarks come in as (B, 72, 2); the module flattens them to (B, 144).
    landmarks = jax.random.normal(k_in, (batch, 72, 2), jnp.float32)

    params = init_params(k_par, num_labels=num_labels)
    prepared = prepare_params(params)          # one-time BN fold + label padding

    out = mlp_forward(landmarks, prepared, num_labels=num_labels)
    out = jax.block_until_ready(out)

    ref = reference_forward(landmarks, params)
    assert out.shape == (batch, num_labels), out.shape
    assert jnp.allclose(out, ref, atol=2e-5, rtol=2e-5), "mismatch vs reference"

    print("KERNEL_OK")
</pallas_src>

<mosaic_0001>
module attributes {stable_mosaic.version = 11 : i64} {
  func.func @mlp_kernel(%arg0: i32, %arg1: memref<8x144xf32, #tpu.memory_space<vmem>>, %arg2: memref<144x128xf32, #tpu.memory_space<vmem>>, %arg3: memref<1x128xf32, #tpu.memory_space<vmem>>, %arg4: memref<128x128xf32, #tpu.memory_space<vmem>>, %arg5: memref<1x128xf32, #tpu.memory_space<vmem>>, %arg6: memref<8x128xf32, #tpu.memory_space<vmem>>) attributes {dimension_semantics = [#tpu.dimension_semantics<parallel>], iteration_bounds = array<i64: 1>, scalar_prefetch = 0 : i64, scratch_operands = 0 : i64, tpu.core_type = #tpu.core_type<tc>, window_params = [{transform_indices = @transform_0, window_bounds = array<i64: 8, 144>}, {pipeline_mode = #tpu.pipeline_mode<synchronous>, transform_indices = @transform_1, window_bounds = array<i64: 144, 128>}, {pipeline_mode = #tpu.pipeline_mode<synchronous>, transform_indices = @transform_2, window_bounds = array<i64: 1, 128>}, {pipeline_mode = #tpu.pipeline_mode<synchronous>, transform_indices = @transform_3, window_bounds = array<i64: 128, 128>}, {pipeline_mode = #tpu.pipeline_mode<synchronous>, transform_indices = @transform_4, window_bounds = array<i64: 1, 128>}, {transform_indices = @transform_5, window_bounds = array<i64: 8, 128>}]} {
    %c0 = arith.constant 0 : index
    %c0_0 = arith.constant 0 : index
    %0 = vector.load %arg1[%c0, %c0_0] : memref<8x144xf32, #tpu.memory_space<vmem>>, vector<8x144xf32>
    %c0_1 = arith.constant 0 : index
    %c0_2 = arith.constant 0 : index
    %1 = vector.load %arg2[%c0_1, %c0_2] : memref<144x128xf32, #tpu.memory_space<vmem>>, vector<144x128xf32>
    %cst = arith.constant dense<0.000000e+00> : vector<8x128xf32>
    %2 = tpu.matmul %0, %1, %cst {dimension_numbers = #tpu.dot_dimension_numbers<[1], [0], [0], [1], [0, 0, 1, 1], [], []>} : vector<8x144xf32>, vector<144x128xf32>, vector<8x128xf32> -> vector<8x128xf32>
    %c0_3 = arith.constant 0 : index
    %c0_4 = arith.constant 0 : index
    %3 = vector.load %arg3[%c0_3, %c0_4] : memref<1x128xf32, #tpu.memory_space<vmem>>, vector<1x128xf32>
    %4 = vector.broadcast %3 : vector<1x128xf32> to vector<8x128xf32>
    %5 = arith.addf %2, %4 : vector<8x128xf32>
    %cst_5 = arith.constant 0.000000e+00 : f32
    %6 = vector.broadcast %cst_5 : f32 to vector<8x128xf32>
    %7 = arith.maximumf %5, %6 : vector<8x128xf32>
    %c0_6 = arith.constant 0 : index
    %c0_7 = arith.constant 0 : index
    %8 = vector.load %arg4[%c0_6, %c0_7] : memref<128x128xf32, #tpu.memory_space<vmem>>, vector<128x128xf32>
    %cst_8 = arith.constant dense<0.000000e+00> : vector<8x128xf32>
    %9 = tpu.matmul %7, %8, %cst_8 {dimension_numbers = #tpu.dot_dimension_numbers<[1], [0], [0], [1], [0, 0, 1, 1], [], []>} : vector<8x128xf32>, vector<128x128xf32>, vector<8x128xf32> -> vector<8x128xf32>
    %c0_9 = arith.constant 0 : index
    %c0_10 = arith.constant 0 : index
    %10 = vector.load %arg5[%c0_9, %c0_10] : memref<1x128xf32, #tpu.memory_space<vmem>>, vector<1x128xf32>
    %11 = vector.broadcast %10 : vector<1x128xf32> to vector<8x128xf32>
    %12 = arith.addf %9, %11 : vector<8x128xf32>
    %13 = arith.negf %12 : vector<8x128xf32>
    %14 = math.exp %13 : vector<8x128xf32>
    %cst_11 = arith.constant 1.000000e+00 : f32
    %15 = vector.broadcast %cst_11 : f32 to vector<8x128xf32>
    %16 = arith.addf %15, %14 : vector<8x128xf32>
    %17 = arith.divf %15, %16 : vector<8x128xf32>
    %c0_12 = arith.constant 0 : index
    %c0_13 = arith.constant 0 : index
    %18 = vector.load %arg6[%c0_12, %c0_13] : memref<8x128xf32, #tpu.memory_space<vmem>>, vector<8x128xf32>
    tpu.vector_store %arg6[%c0_12, %c0_13], %17 {strides = array<i32>} : memref<8x128xf32, #tpu.memory_space<vmem>>, vector<8x128xf32>,
    return
  }
  func.func @transform_0(%arg0: i32) -> (i32, i32) {
    %c0_i32 = arith.constant 0 : i32
    %c0_i32_0 = arith.constant 0 : i32
    return %arg0, %c0_i32 : i32, i32
  }
  func.func @transform_1(%arg0: i32) -> (i32, i32) {
    %c0_i32 = arith.constant 0 : i32
    %c0_i32_0 = arith.constant 0 : i32
    %c0_i32_1 = arith.constant 0 : i32
    return %c0_i32, %c0_i32_0 : i32, i32
  }
  func.func @transform_2(%arg0: i32) -> (i32, i32) {
    %c0_i32 = arith.constant 0 : i32
    %c0_i32_0 = arith.constant 0 : i32
    %c0_i32_1 = arith.constant 0 : i32
    return %c0_i32, %c0_i32_0 : i32, i32
  }
  func.func @transform_3(%arg0: i32) -> (i32, i32) {
    %c0_i32 = arith.constant 0 : i32
    %c0_i32_0 = arith.constant 0 : i32
    %c0_i32_1 = arith.constant 0 : i32
    return %c0_i32, %c0_i32_0 : i32, i32
  }
  func.func @transform_4(%arg0: i32) -> (i32, i32) {
    %c0_i32 = arith.constant 0 : i32
    %c0_i32_0 = arith.constant 0 : i32
    %c0_i32_1 = arith.constant 0 : i32
    return %c0_i32, %c0_i32_0 : i32, i32
  }
  func.func @transform_5(%arg0: i32) -> (i32, i32) {
    %c0_i32 = arith.constant 0 : i32
    %c0_i32_0 = arith.constant 0 : i32
    return %arg0, %c0_i32 : i32, i32
  }
}

</mosaic_0001>

<bundles_post_ra>
// kernel: mlp_forward.1
= control target key start
LH: loop header
LB: loop body
LE: loop exit
PB: predicated region body
PF: predicated region fallthrough
CT: control target
= control target key end

     0   :  { %v376_v3 = vmov 0.0|0.0   ;;  %vm48_vm0 = vcmask 130048   ;;  %s553_s0 = inlined_call_operand.vmem [shape: f32[8,144], index: 0, kind: input, shape index: {}]   ;;  %s554_s1 = inlined_call_operand.vmem [shape: f32[144,128], index: 1, kind: input, shape index: {}]   ;;  %s555_s2 = inlined_call_operand.vmem [shape: f32[1,128], index: 2, kind: input, shape index: {}]   ;;  %s556_s3 = inlined_call_operand.vmem [shape: f32[128,128], index: 3, kind: input, shape index: {}]   ;;  %s557_s4 = inlined_call_operand.vmem [shape: f32[1,128], index: 4, kind: input, shape index: {}]   ;;  %s558_s5 = inlined_call_operand.hbm [shape: f32[8,128], index: 5, kind: output, shape index: {}]  }
   0x1   :  { %v23_v0 = vld [vmem:[%s554_s1] sm:$0xff]  ;;  %v24_v1 = vld [vmem:[%s554_s1 + $0x8] sm:$0xff]  ;;  %v25_v2 = vld [vmem:[%s554_s1 + $0x10] sm:$0xff]  ;;  %293 = vmatprep.subr.bf16.mxu0 %v376_v3  ;;  %320 = vmatprep.subr.bf16.mxu1 %v376_v3 }
   0x2   :  { %v294_v4 = vpack.c.bf16 %v24_v1, %v23_v0  ;;  %v26_v5 = vld [vmem:[%s554_s1 + $0x18] sm:$0xff]  ;;  %v27_v7 = vld [vmem:[%s554_s1 + $0x20] sm:$0xff]  ;;  %v28_v8 = vld [vmem:[%s554_s1 + $0x28] sm:$0xff] }
   0x3   :  { %v297_v6 = vpack.c.bf16 %v26_v5, %v25_v2  ;;  %v22_v9 = vld [vmem:[%s553_s0 + $0x8] sm:$0xff]  ;;  %v123_v10 = vld [vmem:[%s556_s3] sm:$0xff]  ;;  %v300_v11 = vpack.c.bf16 %v28_v8, %v27_v7  ;;  %v125_v13 = vld [vmem:[%s556_s3 + $0x10] sm:$0xff] }
   0x4   :  { %295 = vmatpush1.bf16.msra.mxu0 %v294_v4  ;;  %238 = vmatprep.mubr.msk.f32.mxu0 %vm48_vm0, %v22_v9  ;;  %v124_v12 = vld [vmem:[%s556_s3 + $0x8] sm:$0xff]  ;;  %v126_v14 = vld [vmem:[%s556_s3 + $0x18] sm:$0xff]  ;;  %v29_v15 = vld [vmem:[%s554_s1 + $0x30] sm:$0xff] }
   0x5   :  { %296 = vmatprep.subr.bf16.mxu0 %v376_v3  ;;  %v30_v16 = vld [vmem:[%s554_s1 + $0x38] sm:$0xff]  ;;  %v321_v17 = vpack.c.bf16 %v124_v12, %v123_v10  ;;  %v324_v18 = vpack.c.bf16 %v126_v14, %v125_v13  ;;  %v127_v20 = vld [vmem:[%s556_s3 + $0x20] sm:$0xff]  ;;  %v128_v21 = vld [vmem:[%s556_s3 + $0x28] sm:$0xff] }
   0x6   :  { %v303_v19 = vpack.c.bf16 %v30_v16, %v29_v15 }
   0x7   :  { %322 = vmatpush3.bf16.msra.mxu1 %v321_v17 }
   0x8   :  { %298 = vmatpush1.bf16.msra.mxu0 %v297_v6  ;;  %323 = vmatprep.subr.bf16.mxu1 %v376_v3 }
   0x9   :  { %299 = vmatprep.subr.bf16.mxu0 %v376_v3 }
   0xc   :  { %301 = vmatpush1.bf16.msra.mxu0 %v300_v11 }
   0xd   :  { %10 = vsyncpa [#allocation3], 0  ;;  %302 = vmatprep.subr.bf16.mxu0 %v376_v3  ;;  %v31_v22 = vld [vmem:[%s554_s1 + $0x40] sm:$0xff]  ;;  %v32_v23 = vld [vmem:[%s554_s1 + $0x48] sm:$0xff]  ;;  %325 = vmatpush3.bf16.msra.mxu1 %v324_v18  ;;  %v327_v24 = vpack.c.bf16 %v128_v21, %v127_v20  ;;  %vm377_vm1 = vmmov 0   ;;  %v378_v54 = vmov 0.0  }
   0xe   :  { %v306_v25 = vpack.c.bf16 %v32_v23, %v31_v22  ;;  %326 = vmatprep.subr.bf16.mxu1 %v376_v3  ;;  %v129_v26 = vld [vmem:[%s556_s3 + $0x30] sm:$0xff]  ;;  %v130_v27 = vld [vmem:[%s556_s3 + $0x38] sm:$0xff]  ;;  %v131_v32 = vld [vmem:[%s556_s3 + $0x40] sm:$0xff]  ;;  %290 = vmatprep.mubr.msk.f32.mxu1 %vm377_vm1, %v378_v54 }
   0xf   :  { %v33_v28 = vld [vmem:[%s554_s1 + $0x50] sm:$0xff]  ;;  %v34_v29 = vld [vmem:[%s554_s1 + $0x58] sm:$0xff]  ;;  %v330_v30 = vpack.c.bf16 %v130_v27, %v129_v26  ;;  %v132_v33 = vld [vmem:[%s556_s3 + $0x48] sm:$0xff] }
  0x10   :  { %304 = vmatpush1.bf16.msra.mxu0 %v303_v19  ;;  %v309_v31 = vpack.c.bf16 %v34_v29, %v33_v28  ;;  %v35_v34 = vld [vmem:[%s554_s1 + $0x60] sm:$0xff]  ;;  %v36_v35 = vld [vmem:[%s554_s1 + $0x68] sm:$0xff]  ;;  %v333_v36 = vpack.c.bf16 %v132_v33, %v131_v32  ;;  %v133_v38 = vld [vmem:[%s556_s3 + $0x50] sm:$0xff] }
  0x11   :  { %305 = vmatprep.subr.bf16.mxu0 %v376_v3  ;;  %328 = vmatpush3.bf16.msra.mxu1 %v327_v24  ;;  %v312_v37 = vpack.c.bf16 %v36_v35, %v35_v34  ;;  %v134_v39 = vld [vmem:[%s556_s3 + $0x58] sm:$0xff]  ;;  %v37_v40 = vld [vmem:[%s554_s1 + $0x70] sm:$0xff]  ;;  %v135_v44 = vld [vmem:[%s556_s3 + $0x60] sm:$0xff] }
  0x12   :  { %329 = vmatprep.subr.bf16.mxu1 %v376_v3  ;;  %v38_v41 = vld [vmem:[%s554_s1 + $0x78] sm:$0xff]  ;;  %v336_v42 = vpack.c.bf16 %v134_v39, %v133_v38  ;;  %v136_v45 = vld [vmem:[%s556_s3 + $0x68] sm:$0xff]  ;;  %v39_v46 = vld [vmem:[%s554_s1 + $0x80] sm:$0xff] }
  0x13   :  { %v315_v43 = vpack.c.bf16 %v38_v41, %v37_v40  ;;  %v40_v47 = vld [vmem:[%s554_s1 + $0x88] sm:$0xff]  ;;  %v339_v48 = vpack.c.bf16 %v136_v45, %v135_v44  ;;  %v21_v50 = vld [vmem:[%s553_s0] sm:$0xff]  ;;  %v137_v51 = vld [vmem:[%s556_s3 + $0x70] sm:$0xff] }
  0x14   :  { %307 = vmatpush1.bf16.msra.mxu0 %v306_v25  ;;  %v318_v49 = vpack.c.bf16 %v40_v47, %v39_v46  ;;  %v138_v52 = vld [vmem:[%s556_s3 + $0x78] sm:$0xff]  ;;  %v237_v55 = vld [vmem:[%s555_s2] ss:$0 sm:$0xff]  ;;  %s379_s3 = smov [#allocation2]  }
  0x15   :  { %308 = vmatprep.subr.bf16.mxu0 %v376_v3  ;;  %331 = vmatpush3.bf16.msra.mxu1 %v330_v30  ;;  %v342_v53 = vpack.c.bf16 %v138_v52, %v137_v51  ;;  %v239_v60 = vld [vmem:[%s557_s4] ss:$0 sm:$0xff]  ;;  %s229_s17 = sshll.u32 %s379_s3, 4  ;;  %s230_s17 = int_to_ptr.vmem [resolvable:$true] %s229_s17 }
  0x16   :  { %332 = vmatprep.subr.bf16.mxu1 %v376_v3  ;;  %s352_s2 = scalar_lea.vmem %s230_s17, 128  ;;  %p357_p1 = scmp.lt.s32.totalorder %s230_s17, %s230_s17 }
  0x17   :  { %p353_p0 = scmp.ne.s32.totalorder %s230_s17, %s352_s2  ;;  %p358_p2 = scmp.lt.s32.totalorder %s352_s2, %s352_s2 }
  0x18   :  { %310 = vmatpush1.bf16.msra.mxu0 %v309_v31 }
  0x19   :  { %311 = vmatprep.subr.bf16.mxu0 %v376_v3  ;;  %334 = vmatpush3.bf16.msra.mxu1 %v333_v36  ;;  %p359_p3 = por %p358_p2, %p357_p1 }
  0x1a   :  { %335 = vmatprep.subr.bf16.mxu1 %v376_v3 }
  0x1b   :  { %p360_p4 = pnand %p359_p3, %p353_p0 }
  0x1c   :  { %313 = vmatpush1.bf16.msra.mxu0 %v312_v37 }
  0x1d   :  { %314 = vmatprep.subr.bf16.mxu0 %v376_v3  ;;  %337 = vmatpush3.bf16.msra.mxu1 %v336_v42 }
  0x1e   :  { %338 = vmatprep.subr.bf16.mxu1 %v376_v3 }
  0x20   :  { %316 = vmatpush1.bf16.msra.mxu0 %v315_v43 }
  0x21   :  { %317 = vmatprep.subr.bf16.mxu0 %v376_v3  ;;  %340 = vmatpush3.bf16.msra.mxu1 %v339_v48 }
  0x22   :  { %341 = vmatprep.subr.bf16.mxu1 %v376_v3 }
  0x24   :  { %319 = vmatpush1.bf16.msra.mxu0 %v318_v49 }
  0x25   :  { %343 = vmatpush3.bf16.msra.mxu1 %v342_v53 }
  0x27   :  { %117 = vmatmul.mubr.f32.vlgmr.msra.gmra.mrb[0].mxu0 %v21_v50 }
  0xfa   :  { %v118_v56 = vpop.f32.mrb[0].mxu0 }
  0xfb   :  { %v119_v57 = vadd.f32 %v237_v55, %v118_v56  ;;  %v120_v58 = vpop.f32.mrb[1].mxu0 }
  0xfd   :  { %v122_v59 = vmax.f32 %v119_v57, 0.0 }
  0xff   :  { %291 = vmatmul.mubr.f32.vlgmr.msra.gmra.mrb[0].mxu1 %v122_v59 }
 0x1d2   :  { %v212_v61 = vpop.f32.mrb[0].mxu1 }
 0x1d3   :  { %v213_v62 = vadd.f32 %v239_v60, %v212_v61  ;;  %v292_v63 = vpop.f32.mrb[1].mxu1 }
 0x1d5   :  { %v240_v0 = vmul.f32 -1.442695, %v213_v62 }
 0x1d7   :  { %348 = vpow2.f32 %v240_v0 }
 0x1e1   :  { %v349_v1 = vpop.eup %348 }
 0x1e2   :  { %v219_v2 = vadd.f32 1.0, %v349_v1 }
 0x1e4   :  { %350 = vrcp.f32 %v219_v2 }
 0x1ee   :  { %v351_v3 = vpop.eup %350 }
 0x1ef   :  { %222 = vst [vmem:[#allocation2] sm:$0xff] %v351_v3 }
 0x1f0   :  { %363 = shalt.err (!%p360_p4)
}
 0x1f1   :  { %s364_s19 = scalar_lea.hbm %s558_s5, 128 }
 0x1f2   :  { %p365_p5 = scmp.ne.s32.totalorder %s558_s5, %s364_s19  ;;  %p368_p6 = scmp.lt.u32.totalorder %s364_s19, %s558_s5 }
 0x1f4   :  { %p370_p7 = pnand %p368_p6, %p365_p5 }
 0x1f6   :  { %373 = shalt.err (!%p370_p7)
}
 0x1f7   :  { %232 = dma.vmem_to_hbm [thread:$0]  %s230_s17, 128, %s558_s5, [#allocation3]  }
 0x1f8   :  { %374 = dma.done.wait [#allocation3], 128  }
 0x1f9   :  { %375 = vsyncadd [#allocation3], 4294967168 }
 0x1fa   :  { %236 = vsyncpa [#allocation3], 1 }

</bundles_post_ra>
